<compile_context>
chip_gen: v5e
topology: v5e:2x2
jax: 0.10.0
libtpu: 0.0.40
codegen_flags: <defaults>
</compile_context>

<pallas_src>
import jax
import jax.numpy as jnp
from jax import lax
from jax.experimental import pallas as pl
from jax.experimental.pallas import tpu as pltpu

_MIB = 1024 * 1024


def _round_up(x, m):
    return (x + m - 1) // m * m


def _vmem_capacity_bytes():
    """Per-core VMEM capacity; conservative 64 MiB (v7x) if undetectable."""
    try:
        info = pltpu.get_tpu_info()
        cap = getattr(info, "vmem_capacity_bytes", None)
        if cap:
            return int(cap)
    except Exception:
        pass
    return 64 * _MIB


def _pick_tile(dim, align, cap, max_waste=0.08):
    """Largest tile <= cap (multiple of `align`) with small padding waste."""
    dim_p = _round_up(max(dim, 1), align)
    cap = max(align, min(_round_up(cap, align), dim_p))
    best_t, best_pad = align, _round_up(dim_p, align)
    for t in range(cap, 0, -align):
        padded = _round_up(dim_p, t)
        if (padded - dim_p) / padded <= max_waste:
            return t
        if padded < best_pad:
            best_t, best_pad = t, padded
    return best_t


def _footprint_bytes(tm, tn, tk, r_lanes, split_k):
    """Estimated VMEM footprint: double-buffered bf16 operands (+ f32 acc)."""
    fp = 2 * 2 * (tm * tk + tn * tk + tm * r_lanes + tn * r_lanes + tm * tn)
    if split_k:
        fp += tm * tn * 4
    return fp


# --------------------------------------------------------------------------
# Kernels
# --------------------------------------------------------------------------
def _eora_kernel_fullk(x_ref, w_ref, xa_ref, b_ref, o_ref):
    """tk == K: no k grid axis, no accumulator scratch, single write of o.

    x_ref : (tm, K)  bf16    w_ref : (tn, K)  bf16  (PyTorch (out, in) layout)
    xa_ref: (tm, r)  bf16    b_ref : (tn, r)  bf16  (PyTorch (out, r) layout)
    """
    acc = lax.dot_general(
        xa_ref[...], b_ref[...],
        dimension_numbers=(((1,), (1,)), ((), ())),
        preferred_element_type=jnp.float32)
    acc += lax.dot_general(
        x_ref[...], w_ref[...],
        dimension_numbers=(((1,), (1,)), ((), ())),
        preferred_element_type=jnp.float32)
    o_ref[...] = acc.astype(o_ref.dtype)


def _eora_kernel_splitk(x_ref, w_ref, xa_ref, b_ref, o_ref, acc_ref):
    """K split over grid axis 2; f32 accumulator scratch persists over k."""
    k = pl.program_id(2)

    @pl.when(k == 0)
    def _():
        # Initialize with the low-rank term instead of zeros: removes the
        # tm*tn f32 zero-fill and the extra add on the finalize step.
        acc_ref[...] = lax.dot_general(
            xa_ref[...], b_ref[...],
            dimension_numbers=(((1,), (1,)), ((), ())),
            preferred_element_type=jnp.float32)

    acc_ref[...] += lax.dot_general(
        x_ref[...], w_ref[...],
        dimension_numbers=(((1,), (1,)), ((), ())),
        preferred_element_type=jnp.float32)

    @pl.when(k == pl.num_programs(2) - 1)
    def _():
        o_ref[...] = acc_ref[...].astype(o_ref.dtype)


# --------------------------------------------------------------------------
# Wrapper
# --------------------------------------------------------------------------
def compressed_lowrank_linear(x, compressed_weight, lora_a_weight, lora_b_weight,
                              *, max_tk=None):
    """x: (batch, seq, in) bf16; W: (out, in); A: (r, in); B: (out, r).
    Returns (batch, seq, out) in x.dtype.  `max_tk` is a test knob to force
    the split-K path."""
    batch, seq, in_features = x.shape
    out_features = compressed_weight.shape[0]
    r = lora_a_weight.shape[0]

    M, K, N = batch * seq, in_features, out_features
    x2d = x.reshape(M, K)

    # Low-rank stage 1 (hoisted out of the kernel): xa = x @ A.T -> (M, r).
    # f32 accumulate, cast back to activation dtype (matches lora_A(x) output
    # dtype before lora_B).  Negligible FLOPs/bytes vs. the dense path.
    xa = lax.dot_general(
        x2d, lora_a_weight,
        dimension_numbers=(((1,), (1,)), ((), ())),
        preferred_element_type=jnp.float32).astype(x.dtype)

    # ---- generation-aware budgets / caps ---------------------------------
    vmem_cap = _vmem_capacity_bytes()
    budget = int(0.45 * vmem_cap)          # headroom for Mosaic internal scratch
    is_small_vmem = vmem_cap <= 80 * _MIB  # v7x-class (64 MiB per TensorCore)
    tm_cap = 1024 if is_small_vmem else 2048
    # Roofline knee (flop/byte): how far we are willing to shrink tm to win
    # back a full-K (no accumulator RMW) schedule.
    knee = 320.0 if is_small_vmem else 700.0

    r_lanes = max(_round_up(r, 128), 128)  # r rows pad to 128 lanes in VMEM
    K_p0 = _round_up(K, 128)

    tn = _pick_tile(N, 128, 1024)
    tm = _pick_tile(M, 8, tm_cap)
    tk_cap = K_p0 if max_tk is None else max(128, min(K_p0, _round_up(max_tk, 128)))

    split_k, tk = True, None

    # Prefer tk == K (no f32 accumulator RMW), shrinking tm only while the
    # tile's arithmetic intensity stays at/above the chip's roofline knee.
    if tk_cap >= K_p0:
        tm_try = tm
        while True:
            if _footprint_bytes(tm_try, tn, K_p0, r_lanes, False) <= budget:
                tm, tk, split_k = tm_try, K_p0, False
                break
            next_tm = _pick_tile(M, 8, max(8, tm_try // 2))
            if next_tm >= tm_try or tm_try <= 8:
                break
            if (next_tm * tn) / (next_tm + tn) < knee:
                break
            tm_try = next_tm

    if split_k:
        # Split K: pick the largest tk that fits the budget; shrink tm/tn only
        # if even tk=128 does not fit.
        while True:
            const = _footprint_bytes(tm, tn, 0, r_lanes, True)
            avail = budget - const
            per_tk = 2 * 2 * (tm + tn)                  # 2 bufs x 2 B x (tm+tn)
            tk_max = (avail // per_tk) // 128 * 128 if avail > 0 else 0
            tk_max = min(tk_max, tk_cap)
            if tk_max >= 128:
                tk = _pick_tile(K, 128, tk_max)
                break
            if tm >= tn and tm > 8:
                tm = max(8, _round_up(tm // 2, 8))
            elif tn > 128:
                tn = max(128, _round_up(tn // 2, 128))
            elif tm > 8:
                tm = max(8, _round_up(tm // 2, 8))
            else:
                tk = 128
                break
        split_k = tk < K_p0

    M_p = _round_up(M, tm)
    N_p = _round_up(N, tn)
    K_p = _round_up(K, tk)

    # v7x shards "parallel" grid axes across its 2 TensorCores: make sure at
    # least 2 parallel blocks exist so neither core idles.
    if is_small_vmem and (M_p // tm) * (N_p // tn) < 2:
        if tn > 128:
            tn = max(128, _round_up(tn // 2, 128))
        elif tm > 8:
            tm = max(8, _round_up(tm // 2, 8))
        M_p = _round_up(M, tm)
        N_p = _round_up(N, tn)

    grid_m, grid_n = M_p // tm, N_p // tn

    # ---- padding (no-ops when aligned).  In a real model the static weight
    # pads would be done once at load time, not per forward call. -----------
    x_p = x2d if (M_p == M and K_p == K) else jnp.pad(
        x2d, ((0, M_p - M), (0, K_p - K)))
    w_p = compressed_weight if (N_p == N and K_p == K) else jnp.pad(
        compressed_weight, ((0, N_p - N), (0, K_p - K)))
    xa_p = xa if M_p == M else jnp.pad(xa, ((0, M_p - M), (0, 0)))
    b_p = lora_b_weight if N_p == N else jnp.pad(
        lora_b_weight, ((0, N_p - N), (0, 0)))

    # ---- scheduling hints --------------------------------------------------
    flops = 2 * M * K * N + 2 * M * r * N
    bytes_accessed = 2 * (M_p * K_p * grid_n       # x re-streamed per N tile
                          + N_p * K_p * grid_m     # W re-streamed per M tile
                          + M_p * r                # xa (revisited across j,k)
                          + N_p * r * grid_m
                          + M_p * N_p)             # output written once
    cost = pl.CostEstimate(flops=flops, transcendentals=0,
                           bytes_accessed=bytes_accessed)

    fp = _footprint_bytes(tm, tn, tk, r_lanes, split_k)
    vmem_limit = min(max(16 * _MIB, fp + 8 * _MIB), int(0.85 * vmem_cap))

    if split_k:
        num_k = K_p // tk
        out2d = pl.pallas_call(
            _eora_kernel_splitk,
            out_shape=jax.ShapeDtypeStruct((M_p, N_p), x.dtype),
            grid_spec=pltpu.PrefetchScalarGridSpec(
                num_scalar_prefetch=0,
                grid=(grid_m, grid_n, num_k),
                in_specs=[
                    pl.BlockSpec((tm, tk), lambda i, j, k: (i, k)),   # x
                    pl.BlockSpec((tn, tk), lambda i, j, k: (j, k)),   # W (out,in)
                    pl.BlockSpec((tm, r), lambda i, j, k: (i, 0)),    # x @ A.T
                    pl.BlockSpec((tn, r), lambda i, j, k: (j, 0)),    # B (out,r)
                ],
                out_specs=pl.BlockSpec((tm, tn), lambda i, j, k: (i, j)),
                scratch_shapes=[pltpu.VMEM((tm, tn), jnp.float32)],
            ),
            compiler_params=pltpu.CompilerParams(
                dimension_semantics=("parallel", "parallel", "arbitrary"),
                vmem_limit_bytes=vmem_limit),
            cost_estimate=cost,
        )(x_p, w_p, xa_p, b_p)
    else:
        out2d = pl.pallas_call(
            _eora_kernel_fullk,
            out_shape=jax.ShapeDtypeStruct((M_p, N_p), x.dtype),
            grid_spec=pltpu.PrefetchScalarGridSpec(
                num_scalar_prefetch=0,
                grid=(grid_m, grid_n),
                in_specs=[
                    pl.BlockSpec((tm, K_p), lambda i, j: (i, 0)),     # x
                    pl.BlockSpec((tn, K_p), lambda i, j: (j, 0)),     # W (out,in)
                    pl.BlockSpec((tm, r), lambda i, j: (i, 0)),       # x @ A.T
                    pl.BlockSpec((tn, r), lambda i, j: (j, 0)),       # B (out,r)
                ],
                out_specs=pl.BlockSpec((tm, tn), lambda i, j: (i, j)),
            ),
            compiler_params=pltpu.CompilerParams(
                dimension_semantics=("parallel", "parallel"),
                vmem_limit_bytes=vmem_limit),
            cost_estimate=cost,
        )(x_p, w_p, xa_p, b_p)

    return out2d[:M, :N].reshape(batch, seq, N)


def _reference(x, compressed_weight, lora_a_weight, lora_b_weight):
    batch, seq, in_features = x.shape
    out_features = compressed_weight.shape[0]
    x2d = x.reshape(-1, in_features)
    dense = jnp.dot(x2d, compressed_weight.T, preferred_element_type=jnp.float32)
    xa = jnp.dot(x2d, lora_a_weight.T,
                 preferred_element_type=jnp.float32).astype(x.dtype)
    lora = jnp.dot(xa, lora_b_weight.T, preferred_element_type=jnp.float32)
    return (dense + lora).astype(x.dtype).reshape(batch, seq, out_features)


if __name__ == "__main__":
    key = jax.random.PRNGKey(0)

    # --- aligned small shapes consistent with the module (full-K path) ---
    batch, seq = 2, 8
    in_features, out_features, r = 256, 256, 16

    kx, kw, ka, kb = jax.random.split(key, 4)
    x = jax.random.normal(kx, (batch, seq, in_features), dtype=jnp.bfloat16)
    # __init__ zero-inits compressed_weight; use random values so the dense
    # path actually exercises the kernel (synthetic init, not a checkpoint).
    compressed_weight = (jax.random.normal(kw, (out_features, in_features),
                                           dtype=jnp.float32) * 0.05).astype(jnp.bfloat16)
    lora_a_weight = (jax.random.normal(ka, (r, in_features),
                                       dtype=jnp.float32) * 0.05).astype(jnp.bfloat16)
    lora_b_weight = (jax.random.normal(kb, (out_features, r),
                                       dtype=jnp.float32) * 0.05).astype(jnp.bfloat16)

    out = compressed_lowrank_linear(x, compressed_weight, lora_a_weight, lora_b_weight)
    out = jax.block_until_ready(out)
    ref = _reference(x, compressed_weight, lora_a_weight, lora_b_weight)
    assert out.shape == (batch, seq, out_features)
    assert out.dtype == jnp.bfloat16
    err = jnp.max(jnp.abs(out.astype(jnp.float32) - ref.astype(jnp.float32)))
    assert float(err) < 5e-2, f"max abs error too large: {err}"

    # --- forced split-K path (exercises the accumulator kernel) ---
    out_sk = compressed_lowrank_linear(x, compressed_weight, lora_a_weight,
                                       lora_b_weight, max_tk=128)
    out_sk = jax.block_until_ready(out_sk)
    err_sk = jnp.max(jnp.abs(out_sk.astype(jnp.float32) - ref.astype(jnp.float32)))
    assert float(err_sk) < 5e-2, f"split-K max abs error too large: {err_sk}"

    # --- ragged shapes: exercise the padding path ---
    b2, s2, in2, out2, r2 = 1, 5, 200, 200, 16
    k1, k2, k3, k4 = jax.random.split(jax.random.PRNGKey(1), 4)
    x_r = jax.random.normal(k1, (b2, s2, in2), dtype=jnp.bfloat16)
    w_r = (jax.random.normal(k2, (out2, in2), dtype=jnp.float32) * 0.05).astype(jnp.bfloat16)
    a_r = (jax.random.normal(k3, (r2, in2), dtype=jnp.float32) * 0.05).astype(jnp.bfloat16)
    bw_r = (jax.random.normal(k4, (out2, r2), dtype=jnp.float32) * 0.05).astype(jnp.bfloat16)

    out_r = compressed_lowrank_linear(x_r, w_r, a_r, bw_r)
    out_r = jax.block_until_ready(out_r)
    ref_r = _reference(x_r, w_r, a_r, bw_r)
    assert out_r.shape == (b2, s2, out2)
    err_r = jnp.max(jnp.abs(out_r.astype(jnp.float32) - ref_r.astype(jnp.float32)))
    assert float(err_r) < 5e-2, f"ragged max abs error too large: {err_r}"

    print("KERNEL_OK")
</pallas_src>

<mosaic_0001>
module attributes {stable_mosaic.version = 11 : i64} {
  func.func @_eora_kernel_fullk(%arg0: i32, %arg1: i32, %arg2: memref<16x256xbf16, #tpu.memory_space<vmem>>, %arg3: memref<128x256xbf16, #tpu.memory_space<vmem>>, %arg4: memref<16x16xbf16, #tpu.memory_space<vmem>>, %arg5: memref<128x16xbf16, #tpu.memory_space<vmem>>, %arg6: memref<16x128xbf16, #tpu.memory_space<vmem>>) attributes {dimension_semantics = [#tpu.dimension_semantics<parallel>, #tpu.dimension_semantics<parallel>], iteration_bounds = array<i64: 1, 2>, scalar_prefetch = 0 : i64, scratch_operands = 0 : i64, tpu.core_type = #tpu.core_type<tc>, window_params = [{transform_indices = @transform_0, window_bounds = array<i64: 16, 256>}, {transform_indices = @transform_1, window_bounds = array<i64: 128, 256>}, {transform_indices = @transform_2, window_bounds = array<i64: 16, 16>}, {transform_indices = @transform_3, window_bounds = array<i64: 128, 16>}, {transform_indices = @transform_4, window_bounds = array<i64: 16, 128>}]} {
    %c0 = arith.constant 0 : index
    %c0_0 = arith.constant 0 : index
    %0 = vector.load %arg4[%c0, %c0_0] : memref<16x16xbf16, #tpu.memory_space<vmem>>, vector<16x16xbf16>
    %c0_1 = arith.constant 0 : index
    %c0_2 = arith.constant 0 : index
    %1 = vector.load %arg5[%c0_1, %c0_2] : memref<128x16xbf16, #tpu.memory_space<vmem>>, vector<128x16xbf16>
    %cst = arith.constant dense<0.000000e+00> : vector<16x128xf32>
    %2 = tpu.matmul %0, %1, %cst {dimension_numbers = #tpu.dot_dimension_numbers<[1], [1], [0], [0], [0, 0, 1, 0], [], []>} : vector<16x16xbf16>, vector<128x16xbf16>, vector<16x128xf32> -> vector<16x128xf32>
    %c0_3 = arith.constant 0 : index
    %c0_4 = arith.constant 0 : index
    %3 = vector.load %arg2[%c0_3, %c0_4] : memref<16x256xbf16, #tpu.memory_space<vmem>>, vector<16x256xbf16>
    %c0_5 = arith.constant 0 : index
    %c0_6 = arith.constant 0 : index
    %4 = vector.load %arg3[%c0_5, %c0_6] : memref<128x256xbf16, #tpu.memory_space<vmem>>, vector<128x256xbf16>
    %cst_7 = arith.constant dense<0.000000e+00> : vector<16x128xf32>
    %5 = tpu.matmul %3, %4, %cst_7 {dimension_numbers = #tpu.dot_dimension_numbers<[1], [1], [0], [0], [0, 0, 1, 0], [], []>} : vector<16x256xbf16>, vector<128x256xbf16>, vector<16x128xf32> -> vector<16x128xf32>
    %6 = arith.addf %2, %5 : vector<16x128xf32>
    %7 = arith.truncf %6 : vector<16x128xf32> to vector<16x128xbf16>
    %c0_8 = arith.constant 0 : index
    %c0_9 = arith.constant 0 : index
    %8 = vector.load %arg6[%c0_8, %c0_9] : memref<16x128xbf16, #tpu.memory_space<vmem>>, vector<16x128xbf16>
    tpu.vector_store %arg6[%c0_8, %c0_9], %7 {strides = array<i32>} : memref<16x128xbf16, #tpu.memory_space<vmem>>, vector<16x128xbf16>,
    return
  }
  func.func @transform_0(%arg0: i32, %arg1: i32) -> (i32, i32) {
    %c0_i32 = arith.constant 0 : i32
    %c0_i32_0 = arith.constant 0 : i32
    return %arg0, %c0_i32 : i32, i32
  }
  func.func @transform_1(%arg0: i32, %arg1: i32) -> (i32, i32) {
    %c0_i32 = arith.constant 0 : i32
    %c0_i32_0 = arith.constant 0 : i32
    return %arg1, %c0_i32 : i32, i32
  }
  func.func @transform_2(%arg0: i32, %arg1: i32) -> (i32, i32) {
    %c0_i32 = arith.constant 0 : i32
    %c0_i32_0 = arith.constant 0 : i32
    return %arg0, %c0_i32 : i32, i32
  }
  func.func @transform_3(%arg0: i32, %arg1: i32) -> (i32, i32) {
    %c0_i32 = arith.constant 0 : i32
    %c0_i32_0 = arith.constant 0 : i32
    return %arg1, %c0_i32 : i32, i32
  }
  func.func @transform_4(%arg0: i32, %arg1: i32) -> (i32, i32) {
    %c0_i32 = arith.constant 0 : i32
    return %arg0, %arg1 : i32, i32
  }
}

</mosaic_0001>

<bundles_post_ra>
// kernel: tpu_custom_call.1
= control target key start
LH: loop header
LB: loop body
LE: loop exit
PB: predicated region body
PF: predicated region fallthrough
CT: control target
= control target key end

     0   :  { %9 = vsyncpa [#allocation3], 0  ;;  %s1258_s0 = inlined_call_operand.vmem [shape: bf16[16,256], index: 0, kind: input, shape index: {}]   ;;  %s1259_s1 = inlined_call_operand.hbm [shape: bf16[256,256], index: 1, kind: input, shape index: {}]   ;;  %s1260_s2 = inlined_call_operand.vmem [shape: bf16[16,16], index: 2, kind: input, shape index: {}]   ;;  %s1261_s3 = inlined_call_operand.vmem [shape: bf16[256,16], index: 3, kind: input, shape index: {}]   ;;  %s1262_s4 = inlined_call_operand.hbm [shape: bf16[16,256], index: 4, kind: output, shape index: {}]  }
   0x1   :  { %11 = vsyncpa [#allocation3 + $0x1], 0 }
   0x2   :  { %12 = vsyncpa [#allocation4], 0 }
   0x3   :  { %14 = vsyncpa [#allocation4 + $0x1], 0  ;;  %s1065_s15 = smov 0   ;;  %s1067_s16 = smov 0  }
   0x4   :  { %s1069_s17 = smov 0   ;;  %s1071_s18 = smov 0  }
   0x5   :  { %s1073_s19 = smov 0   ;;  %s1075_s20 = smov 0  }
   0x6 LB: > { %s692_s21 = sadd.s32 4294967295, %s1033_s20   ;;  %s693_s22 = sadd.s32 4294967294, %s1033_s20   ;;  %s1033_s20 = sphi %s1075_s20, %s20_s20   ;;  %s1029_s19 = sphi %s1073_s19, %s1271_s19   ;;  %s1025_s18 = sphi %s1071_s18, %s1270_s18   ;;  %s1021_s17 = sphi %s1069_s17, %s1269_s17   ;;  %s1017_s16 = sphi %s1067_s16, %s1268_s16   ;;  %s1013_s15 = sphi %s1065_s15, %s1267_s15  }
   0x7   : > { %s29_s23 = sadd.s32 1, %s1029_s19  ;;  %s65_s24 = sadd.s32 1, %s1021_s17 }
   0x8   : > { %p30_p0 = scmp.ge.s32.totalorder %s29_s23, 2  ;;  %p72_p1 = scmp.ne.s32.totalorder %s1021_s17, %s1017_s16 }
   0x9   : > { %p73_p2 = scmp.eq.s32.totalorder %s1033_s20, 0  ;;  %p78_p3 = scmp.ne.s32.totalorder %s1017_s16, %s1013_s15 }
   0xa   : > { %s1273_s23 = smov (%p30_p0, %s29_s23), 0  ;;  %p79_p5 = scmp.eq.s32.totalorder %s692_s21, 0 }
   0xb   : > { %p1106_p4 = por %p73_p2, %p72_p1  ;;  %s62_s26 = ssub.s32 %s1029_s19, %s1273_s23 }
   0xc   : > { %p156_p6 = scmp.eq.s32.totalorder %s692_s21, 1  ;;  %p63_p7 = scmp.eq.s32.totalorder %s62_s26, 0 }
   0xd   : > { %p1112_p8 = por %p79_p5, %p78_p3  ;;  %p162_p10 = scmp.eq.s32.totalorder %s693_s22, 1 }
   0xe   : > { %p1116_p9 = por %p156_p6, %p72_p1  ;;  %p697_p12 = scmp.ge.s32.totalorder %s1033_s20, 2 }
   0xf   : > { %s1121_s29 = scalar_select %p63_p7, %s1021_s17, %s65_s24  }
  0x10   : > { %p1123_p11 = por %p162_p10, %p78_p3  ;;  %p866_p13 = scmp.lt.s32.totalorder %s1033_s20, 2 }
  0x11   : > { %s201_s5 = sand.u32 1, %s1021_s17   ;;  %s821_s7 = sshll.u32 %s1029_s19, 7 }
  0x12   : > { %s698_s6 = sshll.u32 %s201_s5, 7  ;;  %s211_s10 = scalar_lea.hbm %s1259_s1, %s821_s7 }
  0x13   : > { %s205_s11 = scalar_lea.vmem [#allocation2], %s698_s6  ;;  %s212_s13 = sshll.u32 %s211_s10, 4  ;;  %s213_s13 = int_to_ptr.hbm [resolvable:$true] %s212_s13 }
  0x14   : > { %s214_s12 = sshll.u32 %s205_s11, 4  ;;  %p859_p0 = pnand %p866_p13, %p1106_p4  ;;  %s215_s12 = int_to_ptr.vmem [resolvable:$true] %s214_s12 }
  0x15   : > { %p702_p1 = scmp.ge.s32.totalorder %s1033_s20, 1  ;;  %s202_s14 = scalar_lea.sflag [#allocation3], %s201_s5 }
  0x16   : > { %s1035_s21 = smov 128   ;;  %s1036_s22 = smov 8  }
  0x17   : > { %861 = dma.hbm_to_vmem [thread:$0]  (!%p859_p0), %s213_s13, 2048, %s215_s12, %s202_s14, %s1035_s21, %s1035_s21, %s1036_s22  }
  0x18   : > { %p231_p2 = scmp.lt.s32.totalorder %s1033_s20, 3 }
  0x1a   : > { %p232_p3 = pnand %p702_p1, %p231_p2 }
  0x1b   : > { %s1139_s24 = sand.u32 (!%p232_p3), 1, %s1017_s16  }
  0x1c   : > { %235 = sbr.rel (%p232_p3) target bundleno = 254 (0xfe), region = 36  ;;  %s703_s26 = sshll.u32 (!%p232_p3), %s1139_s24, 7 }
  0x1d   : > { %s238_s6 = scalar_lea.sflag (!%p232_p3), [#allocation3], %s1139_s24  ;;  %s1143_s7 = scalar_lea.vmem (!%p232_p3), [#allocation2], %s703_s26 }
  0x21   : > { %1004 = dma.done.wait (%p1112_p8), %s238_s6, 2048  }
  0x22   : > { %1006 = vsyncadd (%p1112_p8), %s238_s6, 4294965248  ;;  %s705_s25 = sshll.u32 %s1025_s18, 4  ;;  %vm503_vm0 = vcmask 130048   ;;  %v773_v0 = vld [vmem:[%s1143_s7 + $0x70] sm:$0xf]  ;;  %s971_s26 = scalar_lea.hbm %s1262_s4, 16 }
  0x23   : > { %p298_p4 = scmp.lt.s32.totalorder %s705_s25, 31  ;;  %v848_v1 = vld [vmem:[%s1143_s7 + $0x74] sm:$0xf0]  ;;  %v847_v2 = vld [vmem:[%s1143_s7 + $0x74] sm:$0xf] }
  0x24   : > { %v774_v3 = vor.u32 %v848_v1, %v773_v0  ;;  %v775_v4 = vld [vmem:[%s1143_s7 + $0x78] sm:$0xf0]  ;;  %v765_v8 = vld [vmem:[%s1143_s7 + $0x60] sm:$0xf]  ;;  %v846_v9 = vld [vmem:[%s1143_s7 + $0x64] sm:$0xf0] }
  0x25   : > { %s1275_s25 = smov (!%p298_p4, %s705_s25), 31  ;;  %v778_v6 = vor.u32 %v847_v2, %v775_v4  ;;  %v845_v10 = vld [vmem:[%s1143_s7 + $0x64] sm:$0xf]  ;;  %v767_v11 = vld [vmem:[%s1143_s7 + $0x68] sm:$0xf0]  ;;  %v766_v13 = vor.u32 %v846_v9, %v765_v8 }
  0x26   : > { %s706_s5 = sshll.u32 %s1275_s25, 2  ;;  %430 = vmatpush.bf16.xpose.msra.mxu0 %v774_v3  ;;  %v770_v14 = vor.u32 %v845_v10, %v767_v11  ;;  %v757_v16 = vld [vmem:[%s1143_s7 + $0x50] sm:$0xf]  ;;  %v844_v17 = vld [vmem:[%s1143_s7 + $0x54] sm:$0xf0]  ;;  %s704_s25 = sshll.u32 %s1139_s24, 3 }
  0x27   : > { %s1153_s10 = scalar_lea.vmem %s1261_s3, %s706_s5  ;;  %444 = vmatpush.bf16.xpose.msra.mxu1 %v778_v6  ;;  %v843_v18 = vld [vmem:[%s1143_s7 + $0x54] sm:$0xf]  ;;  %v759_v19 = vld [vmem:[%s1143_s7 + $0x58] sm:$0xf0]  ;;  %v758_v21 = vor.u32 %v844_v17, %v757_v16  ;;  %v749_v24 = vld [vmem:[%s1143_s7 + $0x40] sm:$0xf] }
  0x28   : > { %v830_v5 = vld [vmem:[%s1153_s10 + $0x38] sm:$0xff]  ;;  %v829_v12 = vld [vmem:[%s1153_s10 + $0x30] sm:$0xff]  ;;  %v828_v20 = vld [vmem:[%s1153_s10 + $0x28] sm:$0xff]  ;;  %v762_v22 = vor.u32 %v843_v18, %v759_v19  ;;  %s817_s5 = sshll.u32 %s1025_s18, 2  ;;  %s282_s27 = scalar_lea.vmem [#allocation5], %s704_s25 }
  0x29   : > { %v529_v7 = vsel %vm503_vm0, %v830_v5, 0  ;;  %v526_v15 = vsel %vm503_vm0, %v829_v12, 0  ;;  %v523_v23 = vsel %vm503_vm0, %v828_v20, 0  ;;  %v842_v25 = vld [vmem:[%s1143_s7 + $0x44] sm:$0xf0]  ;;  %v827_v28 = vld [vmem:[%s1153_s10 + $0x20] sm:$0xff] }
  0x2a   : > { %531 = vmatpush.bf16.xpose.msra.mxu2 %v529_v7  ;;  %v841_v26 = vld [vmem:[%s1143_s7 + $0x44] sm:$0xf]  ;;  %v751_v27 = vld [vmem:[%s1143_s7 + $0x48] sm:$0xf0]  ;;  %v750_v29 = vor.u32 %v842_v25, %v749_v24  ;;  %v520_v31 = vsel %vm503_vm0, %v827_v28, 0  ;;  %v826_v36 = vld [vmem:[%s1153_s10 + $0x18] sm:$0xff] }
  0x2b   : > { %v754_v30 = vor.u32 %v841_v26, %v751_v27  ;;  %v741_v32 = vld [vmem:[%s1143_s7 + $0x30] sm:$0xf]  ;;  %v840_v33 = vld [vmem:[%s1143_s7 + $0x34] sm:$0xf0]  ;;  %v839_v34 = vld [vmem:[%s1143_s7 + $0x34] sm:$0xf] }
  0x2c   : > { %v743_v35 = vld [vmem:[%s1143_s7 + $0x38] sm:$0xf0]  ;;  %v742_v37 = vor.u32 %v840_v33, %v741_v32  ;;  %v517_v39 = vsel %vm503_vm0, %v826_v36, 0  ;;  %v733_v40 = vld [vmem:[%s1143_s7 + $0x20] sm:$0xf]  ;;  %v825_v44 = vld [vmem:[%s1153_s10 + $0x10] sm:$0xff] }
  0x2d   : > { %v746_v38 = vor.u32 %v839_v34, %v743_v35  ;;  %v838_v41 = vld [vmem:[%s1143_s7 + $0x24] sm:$0xf0]  ;;  %v837_v42 = vld [vmem:[%s1143_s7 + $0x24] sm:$0xf]  ;;  %v735_v43 = vld [vmem:[%s1143_s7 + $0x28] sm:$0xf0] }
  0x2e   : > { %431 = vmatpush.bf16.xpose.msra.mxu0 %v766_v13  ;;  %v734_v45 = vor.u32 %v838_v41, %v733_v40  ;;  %v738_v46 = vor.u32 %v837_v42, %v735_v43  ;;  %v514_v47 = vsel %vm503_vm0, %v825_v44, 0  ;;  %v725_v48 = vld [vmem:[%s1143_s7 + $0x10] sm:$0xf]  ;;  %v836_v49 = vld [vmem:[%s1143_s7 + $0x14] sm:$0xf0]  ;;  %v824_v52 = vld [vmem:[%s1153_s10 + $0x8] sm:$0xff] }
  0x2f   : > { %445 = vmatpush.bf16.xpose.msra.mxu1 %v770_v14  ;;  %v835_v50 = vld [vmem:[%s1143_s7 + $0x14] sm:$0xf]  ;;  %v727_v51 = vld [vmem:[%s1143_s7 + $0x18] sm:$0xf0]  ;;  %v726_v53 = vor.u32 %v836_v49, %v725_v48  ;;  %v511_v55 = vsel %vm503_vm0, %v824_v52, 0  ;;  %v823_v60 = vld [vmem:[%s1153_s10] sm:$0xff]  ;;  %s563_s10 = scalar_lea.hbm %s1262_s4, %s817_s5 }
  0x30   : > { %v730_v54 = vor.u32 %v835_v50, %v727_v51  ;;  %v717_v56 = vld [vmem:[%s1143_s7] sm:$0xf]  ;;  %v834_v57 = vld [vmem:[%s1143_s7 + $0x4] sm:$0xf0]  ;;  %v833_v58 = vld [vmem:[%s1143_s7 + $0x4] sm:$0xf] }
  0x31   : > { %v719_v59 = vld [vmem:[%s1143_s7 + $0x8] sm:$0xf0]  ;;  %v718_v61 = vor.u32 %v834_v57, %v717_v56  ;;  %v508_v63 = vsel %vm503_vm0, %v823_v60, 0  ;;  %v709_v0 = vld [vmem:[%s1258_s0] sm:$0xf]  ;;  %s564_s11 = sshll.u32 %s282_s27, 4  ;;  %s565_s11 = int_to_ptr.vmem [resolvable:$true] %s564_s11 }
  0x32   : > { %532 = vmatpush.bf16.xpose.msra.mxu2 %v526_v15  ;;  %v722_v62 = vor.u32 %v833_v58, %v719_v59  ;;  %v832_v1 = vld [vmem:[%s1258_s0 + $0x4] sm:$0xf0]  ;;  %v831_v2 = vld [vmem:[%s1258_s0 + $0x4] sm:$0xf]  ;;  %v711_v3 = vld [vmem:[%s1258_s0 + $0x8] sm:$0xf0] }
  0x33   : > { %v710_v4 = vor.u32 %v832_v1, %v709_v0  ;;  %v714_v5 = vor.u32 %v831_v2, %v711_v3  ;;  %v822_v6 = vld [vmem:[%s1260_s2] sm:$0xff]  ;;  %s566_s12 = sshll.u32 %s563_s10, 4  ;;  %s550_s18 = scalar_lea.sflag [#allocation4], %s1139_s24  ;;  %s567_s12 = int_to_ptr.hbm [resolvable:$true] %s566_s12 }
  0x34   : > { %s965_s13 = sshra.s32 %s567_s12, 4  ;;  %s966_s13 = int_to_ptr.hbm [resolvable:$true] %s965_s13 }
  0x35   : > { %s967_s14 = scalar_lea.hbm %s966_s13, 8  ;;  %p972_p8 = scmp.lt.s32.totalorder %s966_s13, %s1262_s4 }
  0x36   : > { %432 = vmatpush.bf16.xpose.msra.mxu0 %v758_v21  ;;  %p968_p5 = scmp.ne.s32.totalorder %s966_s13, %s967_s14  ;;  %p973_p10 = scmp.lt.s32.totalorder %s971_s26, %s967_s14 }
  0x37   : > { %446 = vmatpush.bf16.xpose.msra.mxu1 %v762_v22 }
  0x38   : > { %p969_p6 = pnand %p968_p5, %p1116_p9  ;;  %p974_p13 = por %p973_p10, %p972_p8 }
  0x3a   : > { %533 = vmatpush.bf16.xpose.msra.mxu2 %v523_v23  ;;  %p970_p7 = pneg %p969_p6 }
  0x3c   : > { %p975_p0 = pnand %p974_p13, %p970_p7 }
  0x3e   : > { %433 = vmatpush.bf16.xpose.msra.mxu0 %v750_v29 }
  0x3f   : > { %447 = vmatpush.bf16.xpose.msra.mxu1 %v754_v30 }
  0x42   : > { %534 = vmatpush.bf16.xpose.msra.mxu2 %v520_v31 }
  0x46   : > { %434 = vmatpush.bf16.xpose.msra.mxu0 %v742_v37 }
  0x47   : > { %448 = vmatpush.bf16.xpose.msra.mxu1 %v746_v38 }
  0x4a   : > { %535 = vmatpush.bf16.xpose.msra.mxu2 %v517_v39 }
  0x4e   : > { %435 = vmatpush.bf16.xpose.msra.mxu0 %v734_v45 }
  0x4f   : > { %449 = vmatpush.bf16.xpose.msra.mxu1 %v738_v46 }
  0x52   : > { %536 = vmatpush.bf16.xpose.msra.mxu2 %v514_v47 }
  0x56   : > { %436 = vmatpush.bf16.xpose.msra.mxu0 %v726_v53 }
  0x57   : > { %450 = vmatpush.bf16.xpose.msra.mxu1 %v730_v54 }
  0x5a   : > { %537 = vmatpush.bf16.xpose.msra.mxu2 %v511_v55 }
  0x5e   : > { %437 = vmatpush.bf16.xpose.msra.mxu0 %v718_v61 }
  0x5f   : > { %451 = vmatpush.bf16.xpose.msra.mxu1 %v722_v62 }
  0x62   : > { %538 = vmatpush.bf16.xpose.msra.mxu2 %v508_v63 }
  0x65   : > { %438 = vmatmul.bf16.vlgmr.msra.gmra.mxu0 %v710_v4 }
  0x66   : > { %452 = vmatmul.bf16.vlgmr.msra.gmra.mxu1 %v714_v5 }
  0x69   : > { %815 = vmatmul.msk.bf16.vlgmr.msra.gmra.mxu2 %vm503_vm0, %v822_v6 }
  0xe2   : > { %v439_v7 = vpop.f32.mrf.mxu0 }
  0xe3   : > { %v453_v8 = vpop.f32.mrf.mxu1 }
  0xe4   : > { %v454_v12 = vadd.f32 %v453_v8, %v439_v7 }
  0xea   : > { %v441_v10 = vpop.f32.mrf.mxu0 }
  0xeb   : > { %v455_v11 = vpop.f32.mrf.mxu1 }
  0xec   : > { %v540_v9 = vpop.f32.mrf.mxu2  ;;  %v456_v13 = vadd.f32 %v455_v11, %v441_v10 }
  0xed   : > { %v541_v15 = vadd.f32 %v540_v9, %v454_v12 }
  0xf4   : > { %v542_v14 = vpop.f32.mrf.mxu2 }
  0xf5   : > { %v543_v16 = vadd.f32 %v542_v14, %v456_v13 }
  0xf7   : > { %v852_v17 = vpack.c.bf16 %v543_v16, %v541_v15 }
  0xf9   : > { %853 = vst [vmem:[%s282_s27] sm:$0xff] %v852_v17  }
  0xfa   : > { %978 = shalt.err (!%p975_p0)
}
  0xfb   : > { %s1037_s24 = smov 64   ;;  %s1038_s25 = smov 128  }
  0xfc   : > { %s1039_s5 = smov 4  }
  0xfd   : > { %856 = dma.vmem_to_hbm [thread:$0]  (%p1116_p9), %s565_s11, 128, %s567_s12, %s550_s18, %s1037_s24, %s1038_s25, %s1039_s5  }
  0xfe PF: > { %s581_s8 = sand.u32 1, %s1013_s15   ;;  %p863_p1 = pnand %p697_p12, %p1123_p11 }
  0xff   : > { %s582_s9 = scalar_lea.sflag [#allocation4], %s581_s8 }
 0x100   : > { %p864_p2 = pneg %p863_p1 }
 0x102   : > { %1008 = dma.done.wait (%p864_p2), %s582_s9, 128  }
 0x103   : > { %1010 = vsyncadd (%p864_p2), %s582_s9, 4294967168  ;;  %s20_s20 = sadd.s32 1, %s1033_s20   ;;  %s1267_s15 = smov %s1017_s16 }
 0x104   : > { %p17_p3 = scmp.ge.s32.totalorder %s20_s20, 4   ;;  %s1268_s16 = smov %s1021_s17 }
 0x105   : > { %s1269_s17 = smov %s1121_s29  ;;  %s1270_s18 = smov %s1029_s19 }
 0x106   : > { %s1271_s19 = smov %s1273_s23  ;;  %19 = sbr.rel (!%p17_p3) target bundleno = 6 (0x6), region = 90 }
 0x10b   :  { %588 = vsyncpa [#allocation3], 1 }
 0x10c   :  { %590 = vsyncpa [#allocation3 + $0x1], 1 }
 0x10d   :  { %591 = vsyncpa [#allocation4], 1 }
 0x10e   :  { %593 = vsyncpa [#allocation4 + $0x1], 1 }

</bundles_post_ra>
